<compile_context>
chip_gen: v7x
topology: tpu7x:2x2x1
jax: 0.10.0
libtpu: 0.0.40
codegen_flags: <defaults>
</compile_context>

<pallas_src>
import functools

import jax
import jax.numpy as jnp
import numpy as np
from jax.experimental import pallas as pl
from jax.experimental.pallas import tpu as pltpu

_LANES = 128


def _dtw_kernel(ab_ref, out_ref, cost_ref, *, n: int, m: int):
    """Anti-diagonal (wavefront) DTW dynamic program.

    ab_ref  : (D+1, 128) f32 VMEM ref.  Rows 0..D-1 hold the skewed `a`
              (row d, lane j = a[d-j], clipped), row D holds `b` (lane j = b[j]).
    out_ref : (1, 128) f32 VMEM ref; lane m-1 holds the DTW distance.
    cost_ref: (D, 128) f32 VMEM scratch for the masked cost matrix in
              anti-diagonal layout.
    """
    D = n + m - 1                      # number of anti-diagonals
    L = ab_ref.shape[1]                # lane width (128)
    inf = jnp.float32(jnp.inf)

    # ---- cost matrix: one broadcast pass (C[d, j] = (a[d-j] - b[j])^2) ----
    a_skew = ab_ref[0:D, :]            # (D, L)
    b_row = ab_ref[D:D + 1, :]         # (1, L), broadcast over sublanes
    diff = a_skew - b_row
    cost = diff * diff                 # squared point costs (dtaidistance)

    # Cell (i, j) = (d-j, j) on anti-diagonal d is valid iff 0<=i<n, 0<=j<m.
    d_idx = jax.lax.broadcasted_iota(jnp.int32, (D, L), 0)
    j_idx = jax.lax.broadcasted_iota(jnp.int32, (D, L), 1)
    i_idx = d_idx - j_idx
    valid = (i_idx >= 0) & (i_idx < n) & (j_idx < m)
    # +inf at invalid lanes: keeps boundary cells out of the 3-way min and
    # guarantees the lane-0 wrap of pltpu.roll brings in +inf (lane 127 is
    # always out-of-band).
    cost_ref[...] = jnp.where(valid, cost, inf)

    # ---- wavefront DP: D_cur[j] = C[d-j, j] + min(up, left, diag) ----------
    #   up   = D_prev[j]        (cell (i-1, j))
    #   left = D_prev[j-1]      (cell (i,   j-1))  -> roll by +1 lane
    #   diag = D_prev2[j-1]     (cell (i-1, j-1))  -> roll by +1 lane
    inf_row = jnp.full((1, L), inf, dtype=jnp.float32)
    d_prev = cost_ref[0:1, :]          # diagonal 0: lane 0 = C[0,0], rest +inf
    d_prev2 = inf_row                  # virtual diagonal -1

    for d in range(1, D):
        left = pltpu.roll(d_prev, shift=1, axis=1)
        diag = pltpu.roll(d_prev2, shift=1, axis=1)
        best = jnp.minimum(jnp.minimum(d_prev, left), diag)
        d_cur = cost_ref[d:d + 1, :] + best
        d_prev2 = d_prev
        d_prev = d_cur

    # dtw.distance returns sqrt of the accumulated squared cost; lane m-1 of
    # the last diagonal holds D[n-1, m-1].  Lane-dense unmasked store.
    out_ref[...] = jnp.sqrt(d_prev)


def dtw_distance_pallas(a: jax.Array, b: jax.Array) -> jax.Array:
    """DTW distance between two 1-D sequences via the Pallas kernel."""
    n = int(a.shape[0])
    m = int(b.shape[0])
    D = n + m - 1
    L = _LANES
    a = a.astype(jnp.float32)
    b = b.astype(jnp.float32)

    # Skewed copy of `a` (layout plumbing only; out-of-band entries are masked
    # to +inf inside the kernel) plus the `b` row, merged into ONE slab so the
    # kernel issues a single HBM->VMEM DMA.
    dd = jnp.arange(D, dtype=jnp.int32)[:, None]
    jj = jnp.arange(L, dtype=jnp.int32)[None, :]
    a_skew = a[jnp.clip(dd - jj, 0, n - 1)]                    # (D, L)
    b_row = jnp.zeros((1, L), jnp.float32).at[0, :m].set(b)    # (1, L)
    ab = jnp.concatenate([a_skew, b_row], axis=0)              # (D+1, L)

    out = pl.pallas_call(
        functools.partial(_dtw_kernel, n=n, m=m),
        out_shape=jax.ShapeDtypeStruct((1, L), jnp.float32),
        in_specs=[pl.BlockSpec(memory_space=pltpu.MemorySpace.VMEM)],
        out_specs=pl.BlockSpec(memory_space=pltpu.MemorySpace.VMEM),
        scratch_shapes=[pltpu.VMEM((D, L), jnp.float32)],
    )(ab)
    return out[0, m - 1]


def dtw_module_forward(x1, x2, a, b):
    """Mirror of DTWDistance.forward(x1, x2).

    x1, x2 are ignored (exactly as in the PyTorch module); a, b play the role
    of torch.rand(10) / torch.rand(9), generated deterministically by the
    caller instead of inside forward.
    """
    del x1, x2  # unused, per the reference module
    return dtw_distance_pallas(a, b)


def _dtw_reference(a: np.ndarray, b: np.ndarray) -> float:
    """Pure NumPy reference DTW (same semantics as dtaidistance dtw.distance)."""
    n, m = len(a), len(b)
    Dm = np.full((n + 1, m + 1), np.inf, dtype=np.float64)
    Dm[0, 0] = 0.0
    for i in range(1, n + 1):
        for j in range(1, m + 1):
            c = (a[i - 1] - b[j - 1]) ** 2
            Dm[i, j] = c + min(Dm[i - 1, j], Dm[i, j - 1], Dm[i - 1, j - 1])
    return float(np.sqrt(Dm[n, m]))


if __name__ == "__main__":
    key = jax.random.PRNGKey(0)
    k1, k2, k3, k4 = jax.random.split(key, 4)

    # Module inputs (unused by forward, kept for signature parity).
    x1 = jax.random.normal(k1, (2, 4, 16, 16), dtype=jnp.float32)
    x2 = jax.random.normal(k2, (2, 4, 16, 16), dtype=jnp.float32)

    # Deterministic stand-ins for torch.rand(10) / torch.rand(9).
    a = jax.random.uniform(k3, (10,), dtype=jnp.float32)
    b = jax.random.uniform(k4, (9,), dtype=jnp.float32)

    dist = dtw_module_forward(x1, x2, a, b)
    dist = jax.block_until_ready(dist)

    ref = _dtw_reference(np.asarray(a, dtype=np.float64), np.asarray(b, dtype=np.float64))
    np.testing.assert_allclose(float(dist), ref, rtol=1e-5, atol=1e-5)

    print("KERNEL_OK")
</pallas_src>

<mosaic_0001>
module attributes {stable_mosaic.version = 11 : i64} {
  func.func @_dtw_kernel(%arg0: memref<19x128xf32, #tpu.memory_space<vmem>>, %arg1: memref<1x128xf32, #tpu.memory_space<vmem>>, %arg2: memref<18x128xf32, #tpu.memory_space<vmem>>) attributes {dimension_semantics = [], scalar_prefetch = 0 : i64, scratch_operands = 1 : i64, tpu.core_type = #tpu.core_type<tc>} {
    %c0 = arith.constant 0 : index
    %c0_0 = arith.constant 0 : index
    %0 = vector.load %arg0[%c0, %c0_0] : memref<19x128xf32, #tpu.memory_space<vmem>>, vector<18x128xf32>
    %c18 = arith.constant 18 : index
    %c0_1 = arith.constant 0 : index
    %1 = vector.load %arg0[%c18, %c0_1] : memref<19x128xf32, #tpu.memory_space<vmem>>, vector<1x128xf32>
    %2 = vector.broadcast %1 : vector<1x128xf32> to vector<18x128xf32>
    %3 = arith.subf %0, %2 : vector<18x128xf32>
    %4 = arith.mulf %3, %3 : vector<18x128xf32>
    %5 = tpu.iota {dimensions = array<i32: 0>} : vector<18x128xi32>
    %6 = tpu.iota {dimensions = array<i32: 1>} : vector<18x128xi32>
    %7 = arith.subi %5, %6 : vector<18x128xi32>
    %c0_i32 = arith.constant 0 : i32
    %8 = vector.broadcast %c0_i32 : i32 to vector<18x128xi32>
    %9 = arith.cmpi sge, %7, %8 : vector<18x128xi32>
    %c10_i32 = arith.constant 10 : i32
    %10 = vector.broadcast %c10_i32 : i32 to vector<18x128xi32>
    %11 = arith.cmpi slt, %7, %10 : vector<18x128xi32>
    %12 = arith.andi %9, %11 : vector<18x128xi1>
    %c9_i32 = arith.constant 9 : i32
    %13 = vector.broadcast %c9_i32 : i32 to vector<18x128xi32>
    %14 = arith.cmpi slt, %6, %13 : vector<18x128xi32>
    %15 = arith.andi %12, %14 : vector<18x128xi1>
    %cst = arith.constant 0x7F800000 : f32
    %16 = vector.broadcast %cst : f32 to vector<18x128xf32>
    %17 = arith.select %15, %4, %16 : vector<18x128xi1>, vector<18x128xf32>
    %c0_2 = arith.constant 0 : index
    %c0_3 = arith.constant 0 : index
    %18 = vector.load %arg2[%c0_2, %c0_3] : memref<18x128xf32, #tpu.memory_space<vmem>>, vector<18x128xf32>
    tpu.vector_store %arg2[%c0_2, %c0_3], %17 {strides = array<i32>} : memref<18x128xf32, #tpu.memory_space<vmem>>, vector<18x128xf32>,
    %cst_4 = arith.constant 0x7F800000 : f32
    %19 = vector.broadcast %cst_4 : f32 to vector<1x128xf32>
    %c0_5 = arith.constant 0 : index
    %c0_6 = arith.constant 0 : index
    %20 = vector.load %arg2[%c0_5, %c0_6] : memref<18x128xf32, #tpu.memory_space<vmem>>, vector<1x128xf32>
    %c1_i32 = arith.constant 1 : i32
    %21 = tpu.dynamic_rotate %20 by %c1_i32 dim 1 : vector<1x128xf32>, i32 -> vector<1x128xf32>
    %c1_i32_7 = arith.constant 1 : i32
    %22 = tpu.dynamic_rotate %19 by %c1_i32_7 dim 1 : vector<1x128xf32>, i32 -> vector<1x128xf32>
    %23 = arith.minimumf %20, %21 : vector<1x128xf32>
    %24 = arith.minimumf %23, %22 : vector<1x128xf32>
    %c1 = arith.constant 1 : index
    %c0_8 = arith.constant 0 : index
    %25 = vector.load %arg2[%c1, %c0_8] : memref<18x128xf32, #tpu.memory_space<vmem>>, vector<1x128xf32>
    %26 = arith.addf %25, %24 : vector<1x128xf32>
    %c1_i32_9 = arith.constant 1 : i32
    %27 = tpu.dynamic_rotate %26 by %c1_i32_9 dim 1 : vector<1x128xf32>, i32 -> vector<1x128xf32>
    %c1_i32_10 = arith.constant 1 : i32
    %28 = tpu.dynamic_rotate %20 by %c1_i32_10 dim 1 : vector<1x128xf32>, i32 -> vector<1x128xf32>
    %29 = arith.minimumf %26, %27 : vector<1x128xf32>
    %30 = arith.minimumf %29, %28 : vector<1x128xf32>
    %c2 = arith.constant 2 : index
    %c0_11 = arith.constant 0 : index
    %31 = vector.load %arg2[%c2, %c0_11] : memref<18x128xf32, #tpu.memory_space<vmem>>, vector<1x128xf32>
    %32 = arith.addf %31, %30 : vector<1x128xf32>
    %c1_i32_12 = arith.constant 1 : i32
    %33 = tpu.dynamic_rotate %32 by %c1_i32_12 dim 1 : vector<1x128xf32>, i32 -> vector<1x128xf32>
    %c1_i32_13 = arith.constant 1 : i32
    %34 = tpu.dynamic_rotate %26 by %c1_i32_13 dim 1 : vector<1x128xf32>, i32 -> vector<1x128xf32>
    %35 = arith.minimumf %32, %33 : vector<1x128xf32>
    %36 = arith.minimumf %35, %34 : vector<1x128xf32>
    %c3 = arith.constant 3 : index
    %c0_14 = arith.constant 0 : index
    %37 = vector.load %arg2[%c3, %c0_14] : memref<18x128xf32, #tpu.memory_space<vmem>>, vector<1x128xf32>
    %38 = arith.addf %37, %36 : vector<1x128xf32>
    %c1_i32_15 = arith.constant 1 : i32
    %39 = tpu.dynamic_rotate %38 by %c1_i32_15 dim 1 : vector<1x128xf32>, i32 -> vector<1x128xf32>
    %c1_i32_16 = arith.constant 1 : i32
    %40 = tpu.dynamic_rotate %32 by %c1_i32_16 dim 1 : vector<1x128xf32>, i32 -> vector<1x128xf32>
    %41 = arith.minimumf %38, %39 : vector<1x128xf32>
    %42 = arith.minimumf %41, %40 : vector<1x128xf32>
    %c4 = arith.constant 4 : index
    %c0_17 = arith.constant 0 : index
    %43 = vector.load %arg2[%c4, %c0_17] : memref<18x128xf32, #tpu.memory_space<vmem>>, vector<1x128xf32>
    %44 = arith.addf %43, %42 : vector<1x128xf32>
    %c1_i32_18 = arith.constant 1 : i32
    %45 = tpu.dynamic_rotate %44 by %c1_i32_18 dim 1 : vector<1x128xf32>, i32 -> vector<1x128xf32>
    %c1_i32_19 = arith.constant 1 : i32
    %46 = tpu.dynamic_rotate %38 by %c1_i32_19 dim 1 : vector<1x128xf32>, i32 -> vector<1x128xf32>
    %47 = arith.minimumf %44, %45 : vector<1x128xf32>
    %48 = arith.minimumf %47, %46 : vector<1x128xf32>
    %c5 = arith.constant 5 : index
    %c0_20 = arith.constant 0 : index
    %49 = vector.load %arg2[%c5, %c0_20] : memref<18x128xf32, #tpu.memory_space<vmem>>, vector<1x128xf32>
    %50 = arith.addf %49, %48 : vector<1x128xf32>
    %c1_i32_21 = arith.constant 1 : i32
    %51 = tpu.dynamic_rotate %50 by %c1_i32_21 dim 1 : vector<1x128xf32>, i32 -> vector<1x128xf32>
    %c1_i32_22 = arith.constant 1 : i32
    %52 = tpu.dynamic_rotate %44 by %c1_i32_22 dim 1 : vector<1x128xf32>, i32 -> vector<1x128xf32>
    %53 = arith.minimumf %50, %51 : vector<1x128xf32>
    %54 = arith.minimumf %53, %52 : vector<1x128xf32>
    %c6 = arith.constant 6 : index
    %c0_23 = arith.constant 0 : index
    %55 = vector.load %arg2[%c6, %c0_23] : memref<18x128xf32, #tpu.memory_space<vmem>>, vector<1x128xf32>
    %56 = arith.addf %55, %54 : vector<1x128xf32>
    %c1_i32_24 = arith.constant 1 : i32
    %57 = tpu.dynamic_rotate %56 by %c1_i32_24 dim 1 : vector<1x128xf32>, i32 -> vector<1x128xf32>
    %c1_i32_25 = arith.constant 1 : i32
    %58 = tpu.dynamic_rotate %50 by %c1_i32_25 dim 1 : vector<1x128xf32>, i32 -> vector<1x128xf32>
    %59 = arith.minimumf %56, %57 : vector<1x128xf32>
    %60 = arith.minimumf %59, %58 : vector<1x128xf32>
    %c7 = arith.constant 7 : index
    %c0_26 = arith.constant 0 : index
    %61 = vector.load %arg2[%c7, %c0_26] : memref<18x128xf32, #tpu.memory_space<vmem>>, vector<1x128xf32>
    %62 = arith.addf %61, %60 : vector<1x128xf32>
    %c1_i32_27 = arith.constant 1 : i32
    %63 = tpu.dynamic_rotate %62 by %c1_i32_27 dim 1 : vector<1x128xf32>, i32 -> vector<1x128xf32>
    %c1_i32_28 = arith.constant 1 : i32
    %64 = tpu.dynamic_rotate %56 by %c1_i32_28 dim 1 : vector<1x128xf32>, i32 -> vector<1x128xf32>
    %65 = arith.minimumf %62, %63 : vector<1x128xf32>
    %66 = arith.minimumf %65, %64 : vector<1x128xf32>
    %c8 = arith.constant 8 : index
    %c0_29 = arith.constant 0 : index
    %67 = vector.load %arg2[%c8, %c0_29] : memref<18x128xf32, #tpu.memory_space<vmem>>, vector<1x128xf32>
    %68 = arith.addf %67, %66 : vector<1x128xf32>
    %c1_i32_30 = arith.constant 1 : i32
    %69 = tpu.dynamic_rotate %68 by %c1_i32_30 dim 1 : vector<1x128xf32>, i32 -> vector<1x128xf32>
    %c1_i32_31 = arith.constant 1 : i32
    %70 = tpu.dynamic_rotate %62 by %c1_i32_31 dim 1 : vector<1x128xf32>, i32 -> vector<1x128xf32>
    %71 = arith.minimumf %68, %69 : vector<1x128xf32>
    %72 = arith.minimumf %71, %70 : vector<1x128xf32>
    %c9 = arith.constant 9 : index
    %c0_32 = arith.constant 0 : index
    %73 = vector.load %arg2[%c9, %c0_32] : memref<18x128xf32, #tpu.memory_space<vmem>>, vector<1x128xf32>
    %74 = arith.addf %73, %72 : vector<1x128xf32>
    %c1_i32_33 = arith.constant 1 : i32
    %75 = tpu.dynamic_rotate %74 by %c1_i32_33 dim 1 : vector<1x128xf32>, i32 -> vector<1x128xf32>
    %c1_i32_34 = arith.constant 1 : i32
    %76 = tpu.dynamic_rotate %68 by %c1_i32_34 dim 1 : vector<1x128xf32>, i32 -> vector<1x128xf32>
    %77 = arith.minimumf %74, %75 : vector<1x128xf32>
    %78 = arith.minimumf %77, %76 : vector<1x128xf32>
    %c10 = arith.constant 10 : index
    %c0_35 = arith.constant 0 : index
    %79 = vector.load %arg2[%c10, %c0_35] : memref<18x128xf32, #tpu.memory_space<vmem>>, vector<1x128xf32>
    %80 = arith.addf %79, %78 : vector<1x128xf32>
    %c1_i32_36 = arith.constant 1 : i32
    %81 = tpu.dynamic_rotate %80 by %c1_i32_36 dim 1 : vector<1x128xf32>, i32 -> vector<1x128xf32>
    %c1_i32_37 = arith.constant 1 : i32
    %82 = tpu.dynamic_rotate %74 by %c1_i32_37 dim 1 : vector<1x128xf32>, i32 -> vector<1x128xf32>
    %83 = arith.minimumf %80, %81 : vector<1x128xf32>
    %84 = arith.minimumf %83, %82 : vector<1x128xf32>
    %c11 = arith.constant 11 : index
    %c0_38 = arith.constant 0 : index
    %85 = vector.load %arg2[%c11, %c0_38] : memref<18x128xf32, #tpu.memory_space<vmem>>, vector<1x128xf32>
    %86 = arith.addf %85, %84 : vector<1x128xf32>
    %c1_i32_39 = arith.constant 1 : i32
    %87 = tpu.dynamic_rotate %86 by %c1_i32_39 dim 1 : vector<1x128xf32>, i32 -> vector<1x128xf32>
    %c1_i32_40 = arith.constant 1 : i32
    %88 = tpu.dynamic_rotate %80 by %c1_i32_40 dim 1 : vector<1x128xf32>, i32 -> vector<1x128xf32>
    %89 = arith.minimumf %86, %87 : vector<1x128xf32>
    %90 = arith.minimumf %89, %88 : vector<1x128xf32>
    %c12 = arith.constant 12 : index
    %c0_41 = arith.constant 0 : index
    %91 = vector.load %arg2[%c12, %c0_41] : memref<18x128xf32, #tpu.memory_space<vmem>>, vector<1x128xf32>
    %92 = arith.addf %91, %90 : vector<1x128xf32>
    %c1_i32_42 = arith.constant 1 : i32
    %93 = tpu.dynamic_rotate %92 by %c1_i32_42 dim 1 : vector<1x128xf32>, i32 -> vector<1x128xf32>
    %c1_i32_43 = arith.constant 1 : i32
    %94 = tpu.dynamic_rotate %86 by %c1_i32_43 dim 1 : vector<1x128xf32>, i32 -> vector<1x128xf32>
    %95 = arith.minimumf %92, %93 : vector<1x128xf32>
    %96 = arith.minimumf %95, %94 : vector<1x128xf32>
    %c13 = arith.constant 13 : index
    %c0_44 = arith.constant 0 : index
    %97 = vector.load %arg2[%c13, %c0_44] : memref<18x128xf32, #tpu.memory_space<vmem>>, vector<1x128xf32>
    %98 = arith.addf %97, %96 : vector<1x128xf32>
    %c1_i32_45 = arith.constant 1 : i32
    %99 = tpu.dynamic_rotate %98 by %c1_i32_45 dim 1 : vector<1x128xf32>, i32 -> vector<1x128xf32>
    %c1_i32_46 = arith.constant 1 : i32
    %100 = tpu.dynamic_rotate %92 by %c1_i32_46 dim 1 : vector<1x128xf32>, i32 -> vector<1x128xf32>
    %101 = arith.minimumf %98, %99 : vector<1x128xf32>
    %102 = arith.minimumf %101, %100 : vector<1x128xf32>
    %c14 = arith.constant 14 : index
    %c0_47 = arith.constant 0 : index
    %103 = vector.load %arg2[%c14, %c0_47] : memref<18x128xf32, #tpu.memory_space<vmem>>, vector<1x128xf32>
    %104 = arith.addf %103, %102 : vector<1x128xf32>
    %c1_i32_48 = arith.constant 1 : i32
    %105 = tpu.dynamic_rotate %104 by %c1_i32_48 dim 1 : vector<1x128xf32>, i32 -> vector<1x128xf32>
    %c1_i32_49 = arith.constant 1 : i32
    %106 = tpu.dynamic_rotate %98 by %c1_i32_49 dim 1 : vector<1x128xf32>, i32 -> vector<1x128xf32>
    %107 = arith.minimumf %104, %105 : vector<1x128xf32>
    %108 = arith.minimumf %107, %106 : vector<1x128xf32>
    %c15 = arith.constant 15 : index
    %c0_50 = arith.constant 0 : index
    %109 = vector.load %arg2[%c15, %c0_50] : memref<18x128xf32, #tpu.memory_space<vmem>>, vector<1x128xf32>
    %110 = arith.addf %109, %108 : vector<1x128xf32>
    %c1_i32_51 = arith.constant 1 : i32
    %111 = tpu.dynamic_rotate %110 by %c1_i32_51 dim 1 : vector<1x128xf32>, i32 -> vector<1x128xf32>
    %c1_i32_52 = arith.constant 1 : i32
    %112 = tpu.dynamic_rotate %104 by %c1_i32_52 dim 1 : vector<1x128xf32>, i32 -> vector<1x128xf32>
    %113 = arith.minimumf %110, %111 : vector<1x128xf32>
    %114 = arith.minimumf %113, %112 : vector<1x128xf32>
    %c16 = arith.constant 16 : index
    %c0_53 = arith.constant 0 : index
    %115 = vector.load %arg2[%c16, %c0_53] : memref<18x128xf32, #tpu.memory_space<vmem>>, vector<1x128xf32>
    %116 = arith.addf %115, %114 : vector<1x128xf32>
    %c1_i32_54 = arith.constant 1 : i32
    %117 = tpu.dynamic_rotate %116 by %c1_i32_54 dim 1 : vector<1x128xf32>, i32 -> vector<1x128xf32>
    %c1_i32_55 = arith.constant 1 : i32
    %118 = tpu.dynamic_rotate %110 by %c1_i32_55 dim 1 : vector<1x128xf32>, i32 -> vector<1x128xf32>
    %119 = arith.minimumf %116, %117 : vector<1x128xf32>
    %120 = arith.minimumf %119, %118 : vector<1x128xf32>
    %c17 = arith.constant 17 : index
    %c0_56 = arith.constant 0 : index
    %121 = vector.load %arg2[%c17, %c0_56] : memref<18x128xf32, #tpu.memory_space<vmem>>, vector<1x128xf32>
    %122 = arith.addf %121, %120 : vector<1x128xf32>
    %123 = math.sqrt %122 : vector<1x128xf32>
    %c0_57 = arith.constant 0 : index
    %c0_58 = arith.constant 0 : index
    %124 = vector.load %arg1[%c0_57, %c0_58] : memref<1x128xf32, #tpu.memory_space<vmem>>, vector<1x128xf32>
    tpu.vector_store %arg1[%c0_57, %c0_58], %123 {strides = array<i32>} : memref<1x128xf32, #tpu.memory_space<vmem>>, vector<1x128xf32>,
    return
  }
}

</mosaic_0001>

<bundles_post_ra>
// kernel: tpu_custom_call.1
= control target key start
LH: loop header
LB: loop body
LE: loop exit
PB: predicated region body
PF: predicated region fallthrough
CT: control target
= control target key end

     0   :  { %6 = vsyncpa [#allocation4], 0  ;;  %s330_s0 = inlined_call_operand.hbm [shape: f32[19,128], index: 0, kind: input, shape index: {}]   ;;  %s331_s1 = inlined_call_operand.hbm [shape: f32[1,128], index: 1, kind: output, shape index: {}]  }
   0x1   :  { %7 = vsyncpa [#allocation5], 0  ;;  %s250_s6 = smov [#allocation3]   ;;  %s202_s10 = scalar_lea.hbm %s330_s0, 384 }
   0x2   :  { %s13_s7 = sshll.u32 %s250_s6, 4  ;;  %p203_p0 = scmp.ne.s32.totalorder %s330_s0, %s202_s10  ;;  %s14_s7 = int_to_ptr.vmem [resolvable:$true] %s13_s7 }
   0x3   :  { %p206_p1 = scmp.lt.u32.totalorder %s202_s10, %s330_s0 }
   0x5   :  { %p208_p2 = pnand %p206_p1, %p203_p0 }
   0x7   :  { %211 = shalt.err (!%p208_p2)
}
   0x8   :  { %s212_s15 = scalar_lea.vmem %s14_s7, 384  ;;  %p217_p4 = scmp.lt.s32.totalorder %s14_s7, %s14_s7 }
   0x9   :  { %p213_p3 = scmp.ne.s32.totalorder %s14_s7, %s212_s15  ;;  %p218_p5 = scmp.lt.s32.totalorder %s212_s15, %s212_s15 }
   0xb   :  { %p219_p6 = por %p218_p5, %p217_p4 }
   0xd   :  { %p220_p7 = pnand %p219_p6, %p213_p3 }
   0xf   :  { %223 = shalt.err (!%p220_p7)
}
  0x10   :  { %s251_s16 = smov 128   ;;  %s252_s17 = smov 8  }
  0x11   :  { %19 = dma.hbm_to_vmem [thread:$0]  %s330_s0, 384, %s14_s7, [#allocation4], %s251_s16, %s251_s16, %s252_s17  }
  0x12   :  { %246 = dma.done.wait [#allocation4], 384  }
  0x13   :  { %247 = vsyncadd [#allocation4], 4294966912  ;;  %v37_v0 = vlaneseq  ;;  %v23_v4 = vld [vmem:[#allocation3] sm:$0xff]  ;;  %v285_v5 = vld [vmem:[#allocation3 + $0x12] ss:$0 sm:$0xff]  ;;  %s253_s0 = smov 1  }
  0x14   :  { %v31_v6 = vsub.f32 %v23_v4, %v285_v5  ;;  %v254_v10 = vmov inf   ;;  %v24_v43 = vld [vmem:[#allocation3 + $0x8] sm:$0xff]  ;;  %s255_s20 = smov [#allocation6]  }
  0x15   :  { %v278_v1 = vshrl.u32 %v37_v0, 7  ;;  %v280_v2 = vand.u32 127, %v37_v0  ;;  %v32_v45 = vsub.f32 %v24_v43, %v285_v5  ;;  %s184_s21 = sshll.u32 %s255_s20, 4  ;;  %s185_s21 = int_to_ptr.vmem [resolvable:$true] %s184_s21 }
  0x16   :  { %v34_v7 = vmul.f32 %v31_v6, %v31_v6  ;;  %s224_s22 = scalar_lea.vmem %s185_s21, 16  ;;  %s228_s23 = scalar_lea.vmem %s185_s21, 32 }
  0x17   :  { %v43_v3 = vsub.s32 %v278_v1, %v280_v2  ;;  %vm55_vm1 = vcmp.lt.s32.totalorder %v280_v2, 9  ;;  %v39_v42 = vadd.s32 8, %v278_v1  ;;  %v35_v46 = vmul.f32 %v32_v45, %v32_v45  ;;  %p225_p8 = scmp.ne.s32.totalorder %s185_s21, %s224_s22  ;;  %p229_p9 = scmp.lt.s32.totalorder %s185_s21, %s185_s21 }
  0x18   :  { %p230_p10 = scmp.lt.s32.totalorder %s228_s23, %s224_s22 }
  0x19   :  { %vm46_vm0 = vcmp.ge.s32.totalorder %v43_v3, 0  ;;  %v44_v44 = vsub.s32 %v39_v42, %v280_v2 }
  0x1a   :  { %vm56_vm2 = vmand %vm46_vm0, %vm55_vm1  ;;  %p231_p11 = por %p230_p10, %p229_p9 }
  0x1b   :  { %v59_v8 = vsel %vm56_vm2, %v34_v7, inf  ;;  %vm47_vm3 = vcmp.ge.s32.totalorder %v44_v44, 0  ;;  %vm50_vm4 = vcmp.lt.s32.totalorder %v44_v44, 10 }
  0x1c   :  { %62 = vst [vmem:[#allocation2] sm:$0xff] %v59_v8  ;;  %vm53_vm5 = vmand %vm47_vm3, %vm50_vm4  ;;  %p232_p12 = pnand %p231_p11, %p225_p8 }
  0x1d   :  { %vm57_vm6 = vmand %vm53_vm5, %vm55_vm1 }
  0x1e   :  { %v60_v47 = vsel %vm57_vm6, %v35_v46, inf }
  0x1f   :  { %63 = vst [vmem:[#allocation2 + $0x8] sm:$0xff] %v60_v47 }
  0x23   :  { %v65_v9 = vld [vmem:[#allocation2] sm:$0x1]  ;;  %v72_v14 = vld [vmem:[#allocation2 + $0x1] sm:$0x1]  ;;  %v78_v19 = vld [vmem:[#allocation2 + $0x2] sm:$0x1] }
  0x24   :  { %66 = vrot.lane.b32.xlu0 %v65_v9, %s253_s0  ;;  %v84_v24 = vld [vmem:[#allocation2 + $0x3] sm:$0x1]  ;;  %v90_v29 = vld [vmem:[#allocation2 + $0x4] sm:$0x1]  ;;  %v96_v34 = vld [vmem:[#allocation2 + $0x5] sm:$0x1] }
  0x25   :  { %v102_v39 = vld [vmem:[#allocation2 + $0x6] sm:$0x1]  ;;  %v108_v50 = vld [vmem:[#allocation2 + $0x7] sm:$0x1] }
  0x26   :  { %v114_v55 = vld [vmem:[#allocation2 + $0x8] sm:$0x1]  ;;  %v120_v60 = vld [vmem:[#allocation2 + $0x9] sm:$0x1]  ;;  %v126_v3 = vld [vmem:[#allocation2 + $0xa] sm:$0x1] }
  0x28   :  { %68 = vrot.lane.b32.xlu0 %v254_v10, %s253_s0 }
  0x96   :  { %v67_v11 = vpop.permute.xlu0 %66 }
  0x97   :  { %v70_v12 = vmin.f32 %v65_v9, %v67_v11  ;;  %v132_v9 = vld [vmem:[#allocation2 + $0xb] sm:$0x1] }
  0x9a   :  { %v69_v13 = vpop.permute.xlu0 %68 }
  0x9b   :  { %v71_v15 = vmin.f32 %v70_v12, %v69_v13 }
  0x9d   :  { %v73_v16 = vadd.f32 %v72_v14, %v71_v15  ;;  %v138_v14 = vld [vmem:[#allocation2 + $0xc] sm:$0x1] }
  0x9f   :  { %74 = vrot.lane.b32.xlu1 %v73_v16, %s253_s0 }
 0x111   :  { %v75_v17 = vpop.permute.xlu1 %74 }
 0x112   :  { %v76_v18 = vmin.f32 %v73_v16, %v75_v17 }
 0x114   :  { %v77_v20 = vmin.f32 %v76_v18, %v67_v11 }
 0x116   :  { %v79_v21 = vadd.f32 %v78_v19, %v77_v20  ;;  %v144_v19 = vld [vmem:[#allocation2 + $0xd] sm:$0x1] }
 0x118   :  { %80 = vrot.lane.b32.xlu1 %v79_v21, %s253_s0 }
 0x18a   :  { %v81_v22 = vpop.permute.xlu1 %80 }
 0x18b   :  { %v82_v23 = vmin.f32 %v79_v21, %v81_v22 }
 0x18d   :  { %v83_v25 = vmin.f32 %v82_v23, %v75_v17 }
 0x18f   :  { %v85_v26 = vadd.f32 %v84_v24, %v83_v25  ;;  %v150_v24 = vld [vmem:[#allocation2 + $0xe] sm:$0x1] }
 0x191   :  { %86 = vrot.lane.b32.xlu0 %v85_v26, %s253_s0 }
 0x203   :  { %v87_v27 = vpop.permute.xlu0 %86 }
 0x204   :  { %v88_v28 = vmin.f32 %v85_v26, %v87_v27 }
 0x206   :  { %v89_v30 = vmin.f32 %v88_v28, %v81_v22  ;;  %v25_v28 = vld [vmem:[#allocation3 + $0x10] sm:$0x3] }
 0x208   :  { %v91_v31 = vadd.f32 %v90_v29, %v89_v30  ;;  %v33_v30 = vsub.f32 %v25_v28, %v285_v5 }
 0x20a   :  { %92 = vrot.lane.b32.xlu1 %v91_v31, %s253_s0 }
 0x27c   :  { %v93_v32 = vpop.permute.xlu1 %92 }
 0x27d   :  { %v94_v33 = vmin.f32 %v91_v31, %v93_v32  ;;  %v36_v31 = vmul.f32 %v33_v30, %v33_v30 }
 0x27f   :  { %v95_v35 = vmin.f32 %v94_v33, %v87_v27  ;;  %v40_v27 = vadd.s32 16, %v278_v1 }
 0x281   :  { %v97_v36 = vadd.f32 %v96_v34, %v95_v35  ;;  %v45_v29 = vsub.s32 %v40_v27, %v280_v2  ;;  %v156_v35 = vld [vmem:[#allocation2 + $0xf] sm:$0x1] }
 0x283   :  { %98 = vrot.lane.b32.xlu0 %v97_v36, %s253_s0  ;;  %vm48_vm7 = vcmp.ge.s32.totalorder %v45_v29, 0  ;;  %vm51_vm8 = vcmp.lt.s32.totalorder %v45_v29, 10 }
 0x284   :  { %vm54_vm9 = vmand %vm48_vm7, %vm51_vm8 }
 0x285   :  { %vm58_vm10 = vmand %vm54_vm9, %vm55_vm1 }
 0x2f5   :  { %v99_v37 = vpop.permute.xlu0 %98 }
 0x2f6   :  { %v100_v38 = vmin.f32 %v97_v36, %v99_v37 }
 0x2f8   :  { %v101_v40 = vmin.f32 %v100_v38, %v93_v32  ;;  %v61_v32 = vsel %vm58_vm10, %v36_v31, inf }
 0x2f9   :  { %64 = vst [vmem:[#allocation2 + $0x10] sm:$0x3] %v61_v32 }
 0x2fa   :  { %v103_v41 = vadd.f32 %v102_v39, %v101_v40 }
 0x2fc   :  { %104 = vrot.lane.b32.xlu1 %v103_v41, %s253_s0 }
 0x300   :  { %v162_v39 = vld [vmem:[#allocation2 + $0x10] sm:$0x1]  ;;  %v168_v2 = vld [vmem:[#allocation2 + $0x11] sm:$0x1] }
 0x36e   :  { %v105_v48 = vpop.permute.xlu1 %104 }
 0x36f   :  { %v106_v49 = vmin.f32 %v103_v41, %v105_v48 }
 0x371   :  { %v107_v51 = vmin.f32 %v106_v49, %v99_v37 }
 0x373   :  { %v109_v52 = vadd.f32 %v108_v50, %v107_v51 }
 0x375   :  { %110 = vrot.lane.b32.xlu0 %v109_v52, %s253_s0 }
 0x3e7   :  { %v111_v53 = vpop.permute.xlu0 %110 }
 0x3e8   :  { %v112_v54 = vmin.f32 %v109_v52, %v111_v53 }
 0x3ea   :  { %v113_v56 = vmin.f32 %v112_v54, %v105_v48 }
 0x3ec   :  { %v115_v57 = vadd.f32 %v114_v55, %v113_v56 }
 0x3ee   :  { %116 = vrot.lane.b32.xlu1 %v115_v57, %s253_s0 }
 0x460   :  { %v117_v58 = vpop.permute.xlu1 %116 }
 0x461   :  { %v118_v59 = vmin.f32 %v115_v57, %v117_v58 }
 0x463   :  { %v119_v61 = vmin.f32 %v118_v59, %v111_v53 }
 0x465   :  { %v121_v62 = vadd.f32 %v120_v60, %v119_v61 }
 0x467   :  { %122 = vrot.lane.b32.xlu0 %v121_v62, %s253_s0 }
 0x4d9   :  { %v123_v63 = vpop.permute.xlu0 %122 }
 0x4da   :  { %v124_v0 = vmin.f32 %v121_v62, %v123_v63 }
 0x4dc   :  { %v125_v4 = vmin.f32 %v124_v0, %v117_v58 }
 0x4de   :  { %v127_v6 = vadd.f32 %v126_v3, %v125_v4 }
 0x4e0   :  { %128 = vrot.lane.b32.xlu1 %v127_v6, %s253_s0 }
 0x552   :  { %v129_v7 = vpop.permute.xlu1 %128 }
 0x553   :  { %v130_v8 = vmin.f32 %v127_v6, %v129_v7 }
 0x555   :  { %v131_v10 = vmin.f32 %v130_v8, %v123_v63 }
 0x557   :  { %v133_v11 = vadd.f32 %v132_v9, %v131_v10 }
 0x559   :  { %134 = vrot.lane.b32.xlu0 %v133_v11, %s253_s0 }
 0x5cb   :  { %v135_v12 = vpop.permute.xlu0 %134 }
 0x5cc   :  { %v136_v13 = vmin.f32 %v133_v11, %v135_v12 }
 0x5ce   :  { %v137_v15 = vmin.f32 %v136_v13, %v129_v7 }
 0x5d0   :  { %v139_v16 = vadd.f32 %v138_v14, %v137_v15 }
 0x5d2   :  { %140 = vrot.lane.b32.xlu1 %v139_v16, %s253_s0 }
 0x644   :  { %v141_v17 = vpop.permute.xlu1 %140 }
 0x645   :  { %v142_v18 = vmin.f32 %v139_v16, %v141_v17 }
 0x647   :  { %v143_v20 = vmin.f32 %v142_v18, %v135_v12 }
 0x649   :  { %v145_v21 = vadd.f32 %v144_v19, %v143_v20 }
 0x64b   :  { %146 = vrot.lane.b32.xlu0 %v145_v21, %s253_s0 }
 0x6bd   :  { %v147_v22 = vpop.permute.xlu0 %146 }
 0x6be   :  { %v148_v23 = vmin.f32 %v145_v21, %v147_v22 }
 0x6c0   :  { %v149_v25 = vmin.f32 %v148_v23, %v141_v17 }
 0x6c2   :  { %v151_v26 = vadd.f32 %v150_v24, %v149_v25 }
 0x6c4   :  { %152 = vrot.lane.b32.xlu1 %v151_v26, %s253_s0 }
 0x736   :  { %v153_v33 = vpop.permute.xlu1 %152 }
 0x737   :  { %v154_v34 = vmin.f32 %v151_v26, %v153_v33 }
 0x739   :  { %v155_v36 = vmin.f32 %v154_v34, %v147_v22 }
 0x73b   :  { %v157_v37 = vadd.f32 %v156_v35, %v155_v36 }
 0x73d   :  { %158 = vrot.lane.b32.xlu0 %v157_v37, %s253_s0 }
 0x7af   :  { %v159_v1 = vpop.permute.xlu0 %158 }
 0x7b0   :  { %v160_v38 = vmin.f32 %v157_v37, %v159_v1 }
 0x7b2   :  { %v161_v5 = vmin.f32 %v160_v38, %v153_v33 }
 0x7b4   :  { %v163_v40 = vadd.f32 %v162_v39, %v161_v5 }
 0x7b6   :  { %164 = vrot.lane.b32.xlu1 %v163_v40, %s253_s0 }
 0x828   :  { %v165_v41 = vpop.permute.xlu1 %164 }
 0x829   :  { %v166_v42 = vmin.f32 %v163_v40, %v165_v41 }
 0x82b   :  { %v167_v43 = vmin.f32 %v166_v42, %v159_v1 }
 0x82d   :  { %v169_v44 = vadd.f32 %v168_v2, %v167_v43 }
 0x82f   :  { %200 = vrsqrt.f32 %v169_v44  ;;  %vm172_vm11 = vcmp.eq.f32.partialorder %v169_v44, inf  ;;  %v175_v47 = vand.u32 2147483648, %v169_v44  ;;  %vm174_vm12 = vcmp.eq.f32.partialorder %v169_v44, 0.0 }
 0x839   :  { %v201_v45 = vpop.eup %200 }
 0x83a   :  { %v171_v46 = vmul.f32 %v201_v45, %v169_v44 }
 0x83c   :  { %v173_v48 = vsel %vm172_vm11, %v169_v44, %v171_v46 }
 0x83d   :  { %v176_v49 = vsel %vm174_vm12, %v175_v47, %v173_v48 }
 0x83e   :  { %177 = vst [vmem:[#allocation6] sm:$0x1] %v176_v49 }
 0x83f   :  { %235 = shalt.err (!%p232_p12)
}
 0x840   :  { %s236_s26 = scalar_lea.hbm %s331_s1, 16 }
 0x841   :  { %p237_p13 = scmp.ne.s32.totalorder %s331_s1, %s236_s26  ;;  %p240_p0 = scmp.lt.u32.totalorder %s236_s26, %s331_s1 }
 0x843   :  { %p242_p1 = pnand %p240_p0, %p237_p13 }
 0x845   :  { %245 = shalt.err (!%p242_p1)
}
 0x846   :  { %187 = dma.vmem_to_hbm [thread:$0]  %s185_s21, 16, %s331_s1, [#allocation5]  }
 0x847   :  { %248 = dma.done.wait [#allocation5], 16  }
 0x848   :  { %249 = vsyncadd [#allocation5], 4294967280 }
 0x849   :  { %191 = vsyncpa [#allocation4], 1 }
 0x84a   :  { %192 = vsyncpa [#allocation5], 1 }

</bundles_post_ra>
